<compile_context>
chip_gen: v7x
topology: tpu7x:2x2x1
jax: 0.10.0
libtpu: 0.0.40
codegen_flags: <defaults>
</compile_context>

<pallas_src>
import numpy as np
import jax
import jax.numpy as jnp
from jax import lax
from jax.experimental import pallas as pl
from jax.experimental.pallas import tpu as pltpu

FOCAL_GAMMA = 2.0   # module default; (1 - p) ** gamma implemented as a square.
STAT_ROWS = 8       # stats packed into one (8,128) tile; rows 0..4 used.


# ----------------------------------------------------------------------------
# Per-sample mask-loss statistics.  Pure jnp except for the injected roll /
# reciprocal functions, so the same math runs inside the Pallas kernel
# (pltpu.roll / pl.reciprocal approx) and as the pure-JAX reference
# (jnp.roll / exact 1/x).
# ----------------------------------------------------------------------------
def _mask_sample_stats(pm, tm, ps, *, roll_fn, recip_fn):
    """pm/tm: (G, P) f32 mask logits / targets, ps: (G, 1) f32 matched scores."""
    f32 = jnp.float32
    G, P = pm.shape

    # Shared transcendentals: one exp / log1p pass reused by sigmoid, BCE, focal.
    abs_pm = jnp.abs(pm)
    e = jnp.exp(-abs_pm)
    log1pe = jnp.log1p(e)                        # softplus(-|pm|)
    inv1pe = recip_fn(1.0 + e)                   # EUP reciprocal in the kernel
    pos = pm >= 0.0
    sig = jnp.where(pos, 1.0, e) * inv1pe        # sigmoid(pm)
    one_m_sig = jnp.where(pos, e, 1.0) * inv1pe  # 1 - sigmoid(pm)

    # --- mask BCE with logits (mean over all mask elements)
    bce_el = jnp.maximum(pm, 0.0) - pm * tm + log1pe
    mask_bce = jnp.mean(bce_el)

    # --- improved (focal) dice loss, gamma == 2
    fw = jnp.maximum(one_m_sig * one_m_sig, 1e-8)
    numer = 2.0 * jnp.sum(fw * sig * tm, axis=-1, keepdims=True)
    denom = (jnp.sum(fw * sig, axis=-1, keepdims=True)
             + jnp.sum(tm, axis=-1, keepdims=True))
    dice = jnp.mean(1.0 - (numer + 1.0) * recip_fn(denom + 1.0 + 1e-8))

    # --- boundary loss: 3x3 laplacian w/ replicate padding == 9*x - window_sum
    # Iotas / edge masks built once and shared by both laplacian calls.
    lane = lax.broadcasted_iota(jnp.int32, (G, P), 1)
    row = lax.broadcasted_iota(jnp.int32, (G, P), 0)
    at_l0, at_lN = lane == 0, lane == P - 1
    at_r0, at_rN = row == 0, row == G - 1

    def laplacian(x):
        # clamped 3-tap sum along points (lane axis), then instances (sublanes)
        left = jnp.where(at_l0, x, roll_fn(x, 1, 1))
        right = jnp.where(at_lN, x, roll_fn(x, P - 1, 1))
        cs = left + x + right
        up = jnp.where(at_r0, cs, roll_fn(cs, 1, 0))
        down = jnp.where(at_rN, cs, roll_fn(cs, G - 1, 0))
        return 9.0 * x - (up + cs + down)

    pb = laplacian(pm)
    gb = laplacian(tm)
    # Mirrors the torch module: normalize by the (signed) max response.
    # Scalar reciprocal + per-element multiply (no per-element divide).
    pb = pb * (1.0 / (jnp.max(pb) + 1e-8))
    gb = gb * (1.0 / (jnp.max(gb) + 1e-8))
    gpos = (gb >= 0.5).astype(f32)
    pos_cnt = jnp.sum(gpos)
    neg_cnt = jnp.sum(1.0 - gpos)
    pos_w = neg_cnt / jnp.maximum(pos_cnt, 1e-8)
    w = jnp.where(gb >= 0.5, pos_w, 1.0)
    l1 = jnp.mean(jnp.abs(pb - gb))
    bbce_el = jnp.maximum(pb, 0.0) - pb * gb + jnp.log1p(jnp.exp(-jnp.abs(pb)))
    boundary = jnp.mean(w * bbce_el) + 0.5 * l1

    # --- score loss statistics: IoU-filtered squared error sum + count
    bin_in = pos.astype(f32)                     # sigmoid(pm) >= 0.5 <=> pm >= 0
    bin_tgt = (tm > 0.5).astype(f32)
    inter = jnp.sum(bin_in * bin_tgt, axis=-1, keepdims=True)          # (G, 1)
    union = (jnp.sum(bin_tgt, axis=-1, keepdims=True)
             + jnp.sum(bin_in, axis=-1, keepdims=True) - inter)
    iou = inter / (union + 1e-6)                 # tiny per-row exact divide
    keep = (iou > 0.5).astype(f32)
    sse = jnp.sum(keep * (ps - iou) ** 2)        # ps is (G,1): no relayout
    cnt = jnp.sum(keep)
    return mask_bce, dice, boundary, sse, cnt


# ----------------------------------------------------------------------------
# Pallas kernel: one grid step == one batch sample.  Matched mask rows are
# gathered from HBM with manual DMAs driven by the scalar-prefetched indices.
# ----------------------------------------------------------------------------
def _make_criterion_kernel(Q, G_gt):
    def kernel(idx_q_ref, idx_gt_ref, ps_ref, masks_hbm, spm_hbm, out_ref,
               pm_buf, tm_buf, sem):
        b = pl.program_id(0)
        G, P = pm_buf.shape

        # Issue all 2G row gathers (they overlap each other on the DMA engine).
        @pl.loop(0, G)
        def _(g):
            q = idx_q_ref[b, g]
            t = idx_gt_ref[b, g]
            pltpu.make_async_copy(masks_hbm.at[pl.ds(b * Q + q, 1), :],
                                  pm_buf.at[pl.ds(g, 1), :], sem.at[0]).start()
            pltpu.make_async_copy(spm_hbm.at[pl.ds(b * G_gt + t, 1), :],
                                  tm_buf.at[pl.ds(g, 1), :], sem.at[1]).start()

        # Wait for all of them (each wait drains one row's worth of bytes).
        @pl.loop(0, G)
        def _(g):
            pltpu.make_async_copy(masks_hbm.at[pl.ds(0, 1), :],
                                  pm_buf.at[pl.ds(0, 1), :], sem.at[0]).wait()
            pltpu.make_async_copy(spm_hbm.at[pl.ds(0, 1), :],
                                  tm_buf.at[pl.ds(0, 1), :], sem.at[1]).wait()

        stats = _mask_sample_stats(
            pm_buf[...], tm_buf[...], ps_ref[0],
            roll_fn=pltpu.roll,
            recip_fn=lambda x: pl.reciprocal(x, approx=True))

        # Pack the 5 stats into one (8,128) tile -> single unmasked vreg store.
        sub = lax.broadcasted_iota(jnp.int32, (STAT_ROWS, 128), 0)
        tile = jnp.zeros((STAT_ROWS, 128), jnp.float32)
        for i, v in enumerate(stats):
            tile = jnp.where(sub == i, v, tile)
        out_ref[0] = tile

    return kernel


def _vmem_limit_bytes(G, P):
    """Generation-aware scoped-VMEM limit: working set + headroom, capped by
    the chip's physical VMEM (v7x has only 64 MiB per TensorCore)."""
    gp = G * P * 4
    need = 2 * gp          # pm / tm gather scratch buffers
    need += 12 * gp        # headroom: laplacian / BCE intermediates & spills
    need += 4 << 20        # Mosaic internal scratch, small ps/out blocks
    try:
        cap = int(pltpu.get_tpu_info().vmem_capacity_bytes) * 3 // 4
    except Exception:
        cap = 48 << 20     # conservative fallback (fits v7x's 64 MiB)
    return int(max(16 << 20, min(need, cap)))


def _run_pallas_stats(masks, sp_masks, ps, idx_q, idx_gt):
    B, Q, P = masks.shape
    G_gt = sp_masks.shape[1]
    G = idx_q.shape[1]
    kernel = _make_criterion_kernel(Q, G_gt)
    out = pl.pallas_call(
        kernel,
        out_shape=jax.ShapeDtypeStruct((B, STAT_ROWS, 128), jnp.float32),
        grid_spec=pltpu.PrefetchScalarGridSpec(
            num_scalar_prefetch=2,              # idx_q, idx_gt -> SMEM
            grid=(B,),
            in_specs=[
                # matched scores, sublane-major (G,1) block per sample
                pl.BlockSpec((1, G, 1), lambda b, iq, igt: (b, 0, 0)),
                # mask logits / gt masks stay in HBM; kernel DMAs matched rows
                pl.BlockSpec(memory_space=pl.ANY),
                pl.BlockSpec(memory_space=pl.ANY),
            ],
            out_specs=pl.BlockSpec((1, STAT_ROWS, 128),
                                   lambda b, iq, igt: (b, 0, 0)),
            scratch_shapes=[
                pltpu.VMEM((G, P), jnp.float32),   # gathered pred mask logits
                pltpu.VMEM((G, P), jnp.float32),   # gathered gt masks
                pltpu.SemaphoreType.DMA((2,)),
            ]),
        compiler_params=pltpu.CompilerParams(
            dimension_semantics=("parallel",),     # v7x megacore splits batch
            vmem_limit_bytes=_vmem_limit_bytes(G, P)),
    )(idx_q.astype(jnp.int32), idx_gt.astype(jnp.int32),
      ps.reshape(B, G, 1).astype(jnp.float32),
      masks.reshape(B * Q, P).astype(jnp.float32),
      sp_masks.reshape(B * G_gt, P).astype(jnp.float32))
    return out[:, :5, 0]   # (B, 5): [mask_bce, dice, boundary, sse, cnt]


# ----------------------------------------------------------------------------
# Glue: weighted CE (plain JAX, tiny), loss aggregation.
# ----------------------------------------------------------------------------
def _aggregate(cls_loss, stats, loss_weight, boundary_weight, n_masks,
               fix_dice_loss_weight, fix_mean_loss):
    bce, dice, boundary, sse, cnt = [stats[:, i] for i in range(5)]
    if fix_mean_loss:
        mask_bce_loss = jnp.mean(bce)
        mask_dice_loss = jnp.mean(dice)
    else:
        mask_bce_loss = jnp.sum(bce) / n_masks      # torch: / len(pred_masks)
        mask_dice_loss = jnp.sum(dice) / n_masks
    if fix_dice_loss_weight:
        mask_dice_loss = mask_dice_loss / n_masks * 4
    boundary_loss = jnp.mean(boundary) * boundary_weight
    valid = (cnt > 0).astype(jnp.float32)
    per_mse = sse / jnp.maximum(cnt, 1.0)
    n_valid = jnp.sum(valid)
    score_loss = jnp.where(
        n_valid > 0, jnp.sum(valid * per_mse) / jnp.maximum(n_valid, 1.0), 0.0)
    losses = [cls_loss, mask_bce_loss, mask_dice_loss, boundary_loss, score_loss]
    total = 0.0
    for i in range(5):  # get_balanced_loss with trainable loss_weight (ones init)
        total = total + loss_weight[i] * losses[i]
    return {"inst_loss": total}


def instance_criterion_v2_forward(params, pred, insts, use_pallas=True):
    """pred: {'cls_preds': (B,Q,C+1), 'scores': (B,Q,1), 'masks': (B,Q,P)}
       insts: {'labels_3d': (B,G) int, 'sp_masks': (B,G,P), 'idx_q'/'idx_gt': (B,G)}"""
    cls_preds = pred["cls_preds"].astype(jnp.float32)
    scores = pred["scores"].astype(jnp.float32)
    masks = pred["masks"].astype(jnp.float32)
    labels = insts["labels_3d"]
    sp_masks = insts["sp_masks"].astype(jnp.float32)
    idx_q, idx_gt = insts["idx_q"], insts["idx_gt"]

    B, Q, C1 = cls_preds.shape
    num_classes = C1 - 1
    bix = jnp.arange(B)[:, None]

    # --- weighted cross entropy in plain JAX (tiny QxC1 tiles; XLA fuses it).
    cls_target = jnp.full((B, Q), num_classes, jnp.int32)
    cls_target = cls_target.at[bix, idx_q].set(labels[bix, idx_gt])
    onehot = jax.nn.one_hot(cls_target, C1, dtype=jnp.float32)
    won = onehot * params["class_weight"][None, None, :]
    logp = jax.nn.log_softmax(cls_preds, axis=-1)
    ce_num = -jnp.sum(won * logp, axis=(1, 2))
    ce_den = jnp.sum(won, axis=(1, 2))
    cls_loss = jnp.mean(ce_num / ce_den)   # PyTorch weighted-mean CE per sample

    ps = scores[bix, idx_q, 0]             # (B, G) matched scores (tiny gather)

    if use_pallas:
        stats = _run_pallas_stats(masks, sp_masks, ps, idx_q, idx_gt)
    else:  # pure-JAX reference (same math; jnp.roll, exact reciprocals)
        pm = masks[bix, idx_q]
        tm = sp_masks[bix, idx_gt]

        def one(a, t, s):
            return jnp.stack(_mask_sample_stats(
                a, t, s[:, None], roll_fn=jnp.roll, recip_fn=lambda x: 1.0 / x))
        stats = jax.vmap(one)(pm, tm, ps)

    return _aggregate(cls_loss, stats, params["loss_weight"],
                      params["boundary_weight"], B,
                      params["fix_dice_loss_weight"], params["fix_mean_loss"])


# ----------------------------------------------------------------------------
if __name__ == "__main__":
    key = jax.random.PRNGKey(0)
    B, Q, G, P = 2, 8, 8, 128
    num_classes = 15
    C1 = num_classes + 1
    ks = jax.random.split(key, 5)

    pred = dict(
        cls_preds=jax.random.normal(ks[0], (B, Q, C1), jnp.float32),
        scores=jax.random.uniform(ks[1], (B, Q, 1), dtype=jnp.float32),
        masks=2.0 * jax.random.normal(ks[2], (B, Q, P), jnp.float32),
    )
    insts = dict(
        labels_3d=jax.random.randint(ks[3], (B, G), 0, num_classes),
        sp_masks=(jax.random.uniform(ks[4], (B, G, P)) > 0.5).astype(jnp.float32),
        idx_q=jnp.stack([jnp.arange(G, dtype=jnp.int32),
                         jnp.arange(G - 1, -1, -1, dtype=jnp.int32)]),
        idx_gt=jnp.tile(jnp.arange(G, dtype=jnp.int32)[None], (B, 1)),
    )
    # Deterministic parameter init (matches __init__ shapes):
    params = dict(
        class_weight=jnp.array([1.0] * num_classes + [0.5], jnp.float32),  # non_object_weight=0.5
        loss_weight=jnp.ones((5,), jnp.float32),   # nn.Parameter(torch.ones(5))
        log_vars=jnp.zeros((6,), jnp.float32),     # defined in __init__, unused in forward
        boundary_weight=1.0,
        fix_dice_loss_weight=True,
        fix_mean_loss=False,
    )

    out = instance_criterion_v2_forward(params, pred, insts, use_pallas=True)
    loss = jax.block_until_ready(out["inst_loss"])

    ref = instance_criterion_v2_forward(params, pred, insts, use_pallas=False)
    ref_loss = jax.block_until_ready(ref["inst_loss"])
    assert np.allclose(np.asarray(loss), np.asarray(ref_loss),
                       rtol=1e-3, atol=1e-3), (loss, ref_loss)
    print("KERNEL_OK")
</pallas_src>

<mosaic_0001>
module attributes {stable_mosaic.version = 11 : i64} {
  func.func @kernel(%arg0: i32, %arg1: memref<2x8xi32, #tpu.memory_space<smem>>, %arg2: memref<2x8xi32, #tpu.memory_space<smem>>, %arg3: memref<1x8x1xf32, #tpu.memory_space<vmem>>, %arg4: memref<16x128xf32, #tpu.memory_space<any>>, %arg5: memref<16x128xf32, #tpu.memory_space<any>>, %arg6: memref<1x8x128xf32, #tpu.memory_space<vmem>>, %arg7: memref<8x128xf32, #tpu.memory_space<vmem>>, %arg8: memref<8x128xf32, #tpu.memory_space<vmem>>, %arg9: memref<2x!tpu.dma_semaphore, #tpu.memory_space<semaphore_mem>>) attributes {dimension_semantics = [#tpu.dimension_semantics<parallel>], iteration_bounds = array<i64: 2>, scalar_prefetch = 2 : i64, scratch_operands = 3 : i64, tpu.core_type = #tpu.core_type<tc>, window_params = [{transform_indices = @transform_0, window_bounds = array<i64: 1, 8, 1>}, {}, {}, {transform_indices = @transform_3, window_bounds = array<i64: 1, 8, 128>}]} {
    %c0_i32 = arith.constant 0 : i32
    %c8_i32 = arith.constant 8 : i32
    %0 = arith.addi %c0_i32, %c8_i32 : i32
    %c1_i32 = arith.constant 1 : i32
    scf.for %arg10 = %c0_i32 to %0 step %c1_i32  : i32 {
      %c1_i32_74 = arith.constant 1 : i32
      %222 = arith.muli %arg10, %c1_i32_74 : i32
      %c0_i32_75 = arith.constant 0 : i32
      %223 = arith.addi %c0_i32_75, %222 : i32
      %224 = arith.index_cast %arg0 : i32 to index
      %225 = arith.index_cast %223 : i32 to index
      %226 = memref.load %arg1[%224, %225] : memref<2x8xi32, #tpu.memory_space<smem>>
      %227 = arith.index_cast %arg0 : i32 to index
      %228 = arith.index_cast %223 : i32 to index
      %229 = memref.load %arg2[%227, %228] : memref<2x8xi32, #tpu.memory_space<smem>>
      %c8_i32_76 = arith.constant 8 : i32
      %230 = arith.muli %arg0, %c8_i32_76 : i32
      %231 = arith.addi %230, %226 : i32
      %c0_i32_77 = arith.constant 0 : i32
      %c0_i32_78 = arith.constant 0 : i32
      %232 = tpu.memref_slice %arg4[%231, %c0_i32_78] : memref<16x128xf32, #tpu.memory_space<any>> -> memref<1x128xf32, #tpu.memory_space<any>>
      %c0_i32_79 = arith.constant 0 : i32
      %233 = tpu.memref_slice %arg7[%223, %c0_i32_79] : memref<8x128xf32, #tpu.memory_space<vmem>> -> memref<1x128xf32, #tpu.memory_space<vmem>>
      %234 = tpu.memref_slice %arg9[%c0_i32_77] : memref<2x!tpu.dma_semaphore, #tpu.memory_space<semaphore_mem>> -> memref<1x!tpu.dma_semaphore, #tpu.memory_space<semaphore_mem>>
      %235 = tpu.memref_squeeze %234 : memref<1x!tpu.dma_semaphore, #tpu.memory_space<semaphore_mem>> -> memref<!tpu.dma_semaphore, #tpu.memory_space<semaphore_mem>>
      tpu.enqueue_dma source(%232 : memref<1x128xf32, #tpu.memory_space<any>>) target(%233 : memref<1x128xf32, #tpu.memory_space<vmem>>) target_semaphore(%235 : memref<!tpu.dma_semaphore, #tpu.memory_space<semaphore_mem>>)
      %c8_i32_80 = arith.constant 8 : i32
      %236 = arith.muli %arg0, %c8_i32_80 : i32
      %237 = arith.addi %236, %229 : i32
      %c1_i32_81 = arith.constant 1 : i32
      %c0_i32_82 = arith.constant 0 : i32
      %238 = tpu.memref_slice %arg5[%237, %c0_i32_82] : memref<16x128xf32, #tpu.memory_space<any>> -> memref<1x128xf32, #tpu.memory_space<any>>
      %c0_i32_83 = arith.constant 0 : i32
      %239 = tpu.memref_slice %arg8[%223, %c0_i32_83] : memref<8x128xf32, #tpu.memory_space<vmem>> -> memref<1x128xf32, #tpu.memory_space<vmem>>
      %240 = tpu.memref_slice %arg9[%c1_i32_81] : memref<2x!tpu.dma_semaphore, #tpu.memory_space<semaphore_mem>> -> memref<1x!tpu.dma_semaphore, #tpu.memory_space<semaphore_mem>>
      %241 = tpu.memref_squeeze %240 : memref<1x!tpu.dma_semaphore, #tpu.memory_space<semaphore_mem>> -> memref<!tpu.dma_semaphore, #tpu.memory_space<semaphore_mem>>
      tpu.enqueue_dma source(%238 : memref<1x128xf32, #tpu.memory_space<any>>) target(%239 : memref<1x128xf32, #tpu.memory_space<vmem>>) target_semaphore(%241 : memref<!tpu.dma_semaphore, #tpu.memory_space<semaphore_mem>>)
    }
    %c8_i32_0 = arith.constant 8 : i32
    %c0_i32_1 = arith.constant 0 : i32
    %c8_i32_2 = arith.constant 8 : i32
    %1 = arith.addi %c0_i32_1, %c8_i32_2 : i32
    %c1_i32_3 = arith.constant 1 : i32
    scf.for %arg10 = %c0_i32_1 to %1 step %c1_i32_3  : i32 {
      %c0_i32_74 = arith.constant 0 : i32
      %c0_i32_75 = arith.constant 0 : i32
      %c0_i32_76 = arith.constant 0 : i32
      %222 = tpu.memref_slice %arg4[%c0_i32_75, %c0_i32_76] : memref<16x128xf32, #tpu.memory_space<any>> -> memref<1x128xf32, #tpu.memory_space<any>>
      %c0_i32_77 = arith.constant 0 : i32
      %c0_i32_78 = arith.constant 0 : i32
      %223 = tpu.memref_slice %arg7[%c0_i32_77, %c0_i32_78] : memref<8x128xf32, #tpu.memory_space<vmem>> -> memref<1x128xf32, #tpu.memory_space<vmem>>
      %224 = tpu.memref_slice %arg9[%c0_i32_74] : memref<2x!tpu.dma_semaphore, #tpu.memory_space<semaphore_mem>> -> memref<1x!tpu.dma_semaphore, #tpu.memory_space<semaphore_mem>>
      %225 = tpu.memref_squeeze %224 : memref<1x!tpu.dma_semaphore, #tpu.memory_space<semaphore_mem>> -> memref<!tpu.dma_semaphore, #tpu.memory_space<semaphore_mem>>
      tpu.wait_dma2 semaphore(%225 : memref<!tpu.dma_semaphore, #tpu.memory_space<semaphore_mem>>) src(%222 : memref<1x128xf32, #tpu.memory_space<any>>) dst(%223 : memref<1x128xf32, #tpu.memory_space<vmem>>)
      %c1_i32_79 = arith.constant 1 : i32
      %c0_i32_80 = arith.constant 0 : i32
      %c0_i32_81 = arith.constant 0 : i32
      %226 = tpu.memref_slice %arg5[%c0_i32_80, %c0_i32_81] : memref<16x128xf32, #tpu.memory_space<any>> -> memref<1x128xf32, #tpu.memory_space<any>>
      %c0_i32_82 = arith.constant 0 : i32
      %c0_i32_83 = arith.constant 0 : i32
      %227 = tpu.memref_slice %arg8[%c0_i32_82, %c0_i32_83] : memref<8x128xf32, #tpu.memory_space<vmem>> -> memref<1x128xf32, #tpu.memory_space<vmem>>
      %228 = tpu.memref_slice %arg9[%c1_i32_79] : memref<2x!tpu.dma_semaphore, #tpu.memory_space<semaphore_mem>> -> memref<1x!tpu.dma_semaphore, #tpu.memory_space<semaphore_mem>>
      %229 = tpu.memref_squeeze %228 : memref<1x!tpu.dma_semaphore, #tpu.memory_space<semaphore_mem>> -> memref<!tpu.dma_semaphore, #tpu.memory_space<semaphore_mem>>
      tpu.wait_dma2 semaphore(%229 : memref<!tpu.dma_semaphore, #tpu.memory_space<semaphore_mem>>) src(%226 : memref<1x128xf32, #tpu.memory_space<any>>) dst(%227 : memref<1x128xf32, #tpu.memory_space<vmem>>)
    }
    %c0 = arith.constant 0 : index
    %c0_4 = arith.constant 0 : index
    %2 = vector.load %arg7[%c0, %c0_4] : memref<8x128xf32, #tpu.memory_space<vmem>>, vector<8x128xf32>
    %c0_5 = arith.constant 0 : index
    %c0_6 = arith.constant 0 : index
    %3 = vector.load %arg8[%c0_5, %c0_6] : memref<8x128xf32, #tpu.memory_space<vmem>>, vector<8x128xf32>
    %c0_7 = arith.constant 0 : index
    %c0_8 = arith.constant 0 : index
    %c0_9 = arith.constant 0 : index
    %4 = vector.load %arg3[%c0_7, %c0_8, %c0_9] : memref<1x8x1xf32, #tpu.memory_space<vmem>>, vector<1x8x1xf32>
    %5 = vector.shape_cast %4 : vector<1x8x1xf32> to vector<8x1xf32>
    %6 = math.absf %2 : vector<8x128xf32>
    %cst = arith.constant 0.000000e+00 : f32
    %7 = vector.broadcast %cst : f32 to vector<8x128xf32>
    %8 = arith.subf %7, %6 : vector<8x128xf32>
    %9 = math.exp %8 : vector<8x128xf32>
    %10 = math.log1p %9 : vector<8x128xf32>
    %cst_10 = arith.constant 1.000000e+00 : f32
    %11 = vector.broadcast %cst_10 : f32 to vector<8x128xf32>
    %12 = arith.addf %11, %9 : vector<8x128xf32>
    %13 = tpu.reciprocal %12 {approx = true} : vector<8x128xf32> -> vector<8x128xf32>
    %cst_11 = arith.constant 0.000000e+00 : f32
    %14 = vector.broadcast %cst_11 : f32 to vector<8x128xf32>
    %15 = arith.cmpf oge, %2, %14 : vector<8x128xf32>
    %cst_12 = arith.constant 1.000000e+00 : f32
    %16 = vector.broadcast %cst_12 : f32 to vector<8x128xf32>
    %17 = arith.select %15, %16, %9 : vector<8x128xi1>, vector<8x128xf32>
    %18 = arith.mulf %17, %13 : vector<8x128xf32>
    %cst_13 = arith.constant 1.000000e+00 : f32
    %19 = vector.broadcast %cst_13 : f32 to vector<8x128xf32>
    %20 = arith.select %15, %9, %19 : vector<8x128xi1>, vector<8x128xf32>
    %21 = arith.mulf %20, %13 : vector<8x128xf32>
    %cst_14 = arith.constant 0.000000e+00 : f32
    %22 = vector.broadcast %cst_14 : f32 to vector<8x128xf32>
    %23 = arith.maximumf %2, %22 : vector<8x128xf32>
    %24 = arith.mulf %2, %3 : vector<8x128xf32>
    %25 = arith.subf %23, %24 : vector<8x128xf32>
    %26 = arith.addf %25, %10 : vector<8x128xf32>
    %27 = vector.shape_cast %26 : vector<8x128xf32> to vector<1x8x128xf32>
    %cst_15 = arith.constant dense<0.000000e+00> : vector<1xf32>
    %28 = vector.multi_reduction <add>, %27, %cst_15 [1, 2] : vector<1x8x128xf32> to vector<1xf32>
    %29 = vector.shape_cast %28 : vector<1xf32> to vector<1x1x1xf32>
    %30 = vector.extract %29[0, 0, 0] : f32 from vector<1x1x1xf32>
    %cst_16 = arith.constant 1.024000e+03 : f32
    %31 = arith.divf %30, %cst_16 : f32
    %32 = arith.mulf %21, %21 : vector<8x128xf32>
    %cst_17 = arith.constant 9.99999993E-9 : f32
    %33 = vector.broadcast %cst_17 : f32 to vector<8x128xf32>
    %34 = arith.maximumf %32, %33 : vector<8x128xf32>
    %35 = arith.mulf %34, %18 : vector<8x128xf32>
    %36 = arith.mulf %35, %3 : vector<8x128xf32>
    %cst_18 = arith.constant dense<0.000000e+00> : vector<8xf32>
    %37 = vector.multi_reduction <add>, %36, %cst_18 [1] : vector<8x128xf32> to vector<8xf32>
    %38 = vector.shape_cast %37 : vector<8xf32> to vector<8x1xf32>
    %cst_19 = arith.constant 2.000000e+00 : f32
    %39 = vector.broadcast %cst_19 : f32 to vector<8x1xf32>
    %40 = arith.mulf %39, %38 : vector<8x1xf32>
    %41 = arith.mulf %34, %18 : vector<8x128xf32>
    %cst_20 = arith.constant dense<0.000000e+00> : vector<8xf32>
    %42 = vector.multi_reduction <add>, %41, %cst_20 [1] : vector<8x128xf32> to vector<8xf32>
    %43 = vector.shape_cast %42 : vector<8xf32> to vector<8x1xf32>
    %cst_21 = arith.constant dense<0.000000e+00> : vector<8xf32>
    %44 = vector.multi_reduction <add>, %3, %cst_21 [1] : vector<8x128xf32> to vector<8xf32>
    %45 = vector.shape_cast %44 : vector<8xf32> to vector<8x1xf32>
    %46 = arith.addf %43, %45 : vector<8x1xf32>
    %cst_22 = arith.constant 1.000000e+00 : f32
    %47 = vector.broadcast %cst_22 : f32 to vector<8x1xf32>
    %48 = arith.addf %40, %47 : vector<8x1xf32>
    %cst_23 = arith.constant 1.000000e+00 : f32
    %49 = vector.broadcast %cst_23 : f32 to vector<8x1xf32>
    %50 = arith.addf %46, %49 : vector<8x1xf32>
    %cst_24 = arith.constant 9.99999993E-9 : f32
    %51 = vector.broadcast %cst_24 : f32 to vector<8x1xf32>
    %52 = arith.addf %50, %51 : vector<8x1xf32>
    %53 = tpu.reciprocal %52 {approx = true} : vector<8x1xf32> -> vector<8x1xf32>
    %54 = arith.mulf %48, %53 : vector<8x1xf32>
    %cst_25 = arith.constant 1.000000e+00 : f32
    %55 = vector.broadcast %cst_25 : f32 to vector<8x1xf32>
    %56 = arith.subf %55, %54 : vector<8x1xf32>
    %57 = vector.shape_cast %56 : vector<8x1xf32> to vector<1x8x1xf32>
    %cst_26 = arith.constant dense<0.000000e+00> : vector<1xf32>
    %58 = vector.multi_reduction <add>, %57, %cst_26 [1, 2] : vector<1x8x1xf32> to vector<1xf32>
    %59 = vector.shape_cast %58 : vector<1xf32> to vector<1x1x1xf32>
    %60 = vector.extract %59[0, 0, 0] : f32 from vector<1x1x1xf32>
    %cst_27 = arith.constant 8.000000e+00 : f32
    %61 = arith.divf %60, %cst_27 : f32
    %62 = tpu.iota {dimensions = array<i32: 1>} : vector<8x128xi32>
    %63 = tpu.iota {dimensions = array<i32: 0>} : vector<8x128xi32>
    %c0_i32_28 = arith.constant 0 : i32
    %64 = vector.broadcast %c0_i32_28 : i32 to vector<8x128xi32>
    %65 = arith.cmpi eq, %62, %64 : vector<8x128xi32>
    %c127_i32 = arith.constant 127 : i32
    %66 = vector.broadcast %c127_i32 : i32 to vector<8x128xi32>
    %67 = arith.cmpi eq, %62, %66 : vector<8x128xi32>
    %c0_i32_29 = arith.constant 0 : i32
    %68 = vector.broadcast %c0_i32_29 : i32 to vector<8x128xi32>
    %69 = arith.cmpi eq, %63, %68 : vector<8x128xi32>
    %c7_i32 = arith.constant 7 : i32
    %70 = vector.broadcast %c7_i32 : i32 to vector<8x128xi32>
    %71 = arith.cmpi eq, %63, %70 : vector<8x128xi32>
    %c1_i32_30 = arith.constant 1 : i32
    %72 = tpu.dynamic_rotate %2 by %c1_i32_30 dim 1 : vector<8x128xf32>, i32 -> vector<8x128xf32>
    %73 = arith.select %65, %2, %72 : vector<8x128xi1>, vector<8x128xf32>
    %c127_i32_31 = arith.constant 127 : i32
    %74 = tpu.dynamic_rotate %2 by %c127_i32_31 dim 1 : vector<8x128xf32>, i32 -> vector<8x128xf32>
    %75 = arith.select %67, %2, %74 : vector<8x128xi1>, vector<8x128xf32>
    %76 = arith.addf %73, %2 : vector<8x128xf32>
    %77 = arith.addf %76, %75 : vector<8x128xf32>
    %c1_i32_32 = arith.constant 1 : i32
    %78 = tpu.dynamic_rotate %77 by %c1_i32_32 dim 0 : vector<8x128xf32>, i32 -> vector<8x128xf32>
    %79 = arith.select %69, %77, %78 : vector<8x128xi1>, vector<8x128xf32>
    %c7_i32_33 = arith.constant 7 : i32
    %80 = tpu.dynamic_rotate %77 by %c7_i32_33 dim 0 : vector<8x128xf32>, i32 -> vector<8x128xf32>
    %81 = arith.select %71, %77, %80 : vector<8x128xi1>, vector<8x128xf32>
    %cst_34 = arith.constant 9.000000e+00 : f32
    %82 = vector.broadcast %cst_34 : f32 to vector<8x128xf32>
    %83 = arith.mulf %82, %2 : vector<8x128xf32>
    %84 = arith.addf %79, %77 : vector<8x128xf32>
    %85 = arith.addf %84, %81 : vector<8x128xf32>
    %86 = arith.subf %83, %85 : vector<8x128xf32>
    %c1_i32_35 = arith.constant 1 : i32
    %87 = tpu.dynamic_rotate %3 by %c1_i32_35 dim 1 : vector<8x128xf32>, i32 -> vector<8x128xf32>
    %88 = arith.select %65, %3, %87 : vector<8x128xi1>, vector<8x128xf32>
    %c127_i32_36 = arith.constant 127 : i32
    %89 = tpu.dynamic_rotate %3 by %c127_i32_36 dim 1 : vector<8x128xf32>, i32 -> vector<8x128xf32>
    %90 = arith.select %67, %3, %89 : vector<8x128xi1>, vector<8x128xf32>
    %91 = arith.addf %88, %3 : vector<8x128xf32>
    %92 = arith.addf %91, %90 : vector<8x128xf32>
    %c1_i32_37 = arith.constant 1 : i32
    %93 = tpu.dynamic_rotate %92 by %c1_i32_37 dim 0 : vector<8x128xf32>, i32 -> vector<8x128xf32>
    %94 = arith.select %69, %92, %93 : vector<8x128xi1>, vector<8x128xf32>
    %c7_i32_38 = arith.constant 7 : i32
    %95 = tpu.dynamic_rotate %92 by %c7_i32_38 dim 0 : vector<8x128xf32>, i32 -> vector<8x128xf32>
    %96 = arith.select %71, %92, %95 : vector<8x128xi1>, vector<8x128xf32>
    %cst_39 = arith.constant 9.000000e+00 : f32
    %97 = vector.broadcast %cst_39 : f32 to vector<8x128xf32>
    %98 = arith.mulf %97, %3 : vector<8x128xf32>
    %99 = arith.addf %94, %92 : vector<8x128xf32>
    %100 = arith.addf %99, %96 : vector<8x128xf32>
    %101 = arith.subf %98, %100 : vector<8x128xf32>
    %102 = vector.shape_cast %86 : vector<8x128xf32> to vector<1x8x128xf32>
    %cst_40 = arith.constant dense<0xFF800000> : vector<1xf32>
    %103 = vector.multi_reduction <maximumf>, %102, %cst_40 [1, 2] : vector<1x8x128xf32> to vector<1xf32>
    %104 = vector.shape_cast %103 : vector<1xf32> to vector<1x1x1xf32>
    %105 = vector.extract %104[0, 0, 0] : f32 from vector<1x1x1xf32>
    %cst_41 = arith.constant 9.99999993E-9 : f32
    %106 = arith.addf %105, %cst_41 : f32
    %cst_42 = arith.constant 1.000000e+00 : f32
    %107 = arith.divf %cst_42, %106 : f32
    %108 = vector.broadcast %107 : f32 to vector<8x128xf32>
    %109 = arith.mulf %86, %108 : vector<8x128xf32>
    %110 = vector.shape_cast %101 : vector<8x128xf32> to vector<1x8x128xf32>
    %cst_43 = arith.constant dense<0xFF800000> : vector<1xf32>
    %111 = vector.multi_reduction <maximumf>, %110, %cst_43 [1, 2] : vector<1x8x128xf32> to vector<1xf32>
    %112 = vector.shape_cast %111 : vector<1xf32> to vector<1x1x1xf32>
    %113 = vector.extract %112[0, 0, 0] : f32 from vector<1x1x1xf32>
    %cst_44 = arith.constant 9.99999993E-9 : f32
    %114 = arith.addf %113, %cst_44 : f32
    %cst_45 = arith.constant 1.000000e+00 : f32
    %115 = arith.divf %cst_45, %114 : f32
    %116 = vector.broadcast %115 : f32 to vector<8x128xf32>
    %117 = arith.mulf %101, %116 : vector<8x128xf32>
    %cst_46 = arith.constant 5.000000e-01 : f32
    %118 = vector.broadcast %cst_46 : f32 to vector<8x128xf32>
    %119 = arith.cmpf oge, %117, %118 : vector<8x128xf32>
    %120 = arith.extui %119 : vector<8x128xi1> to vector<8x128xi32>
    %121 = arith.sitofp %120 : vector<8x128xi32> to vector<8x128xf32>
    %122 = vector.shape_cast %121 : vector<8x128xf32> to vector<1x8x128xf32>
    %cst_47 = arith.constant dense<0.000000e+00> : vector<1xf32>
    %123 = vector.multi_reduction <add>, %122, %cst_47 [1, 2] : vector<1x8x128xf32> to vector<1xf32>
    %124 = vector.shape_cast %123 : vector<1xf32> to vector<1x1x1xf32>
    %125 = vector.extract %124[0, 0, 0] : f32 from vector<1x1x1xf32>
    %cst_48 = arith.constant 1.000000e+00 : f32
    %126 = vector.broadcast %cst_48 : f32 to vector<8x128xf32>
    %127 = arith.subf %126, %121 : vector<8x128xf32>
    %128 = vector.shape_cast %127 : vector<8x128xf32> to vector<1x8x128xf32>
    %cst_49 = arith.constant dense<0.000000e+00> : vector<1xf32>
    %129 = vector.multi_reduction <add>, %128, %cst_49 [1, 2] : vector<1x8x128xf32> to vector<1xf32>
    %130 = vector.shape_cast %129 : vector<1xf32> to vector<1x1x1xf32>
    %131 = vector.extract %130[0, 0, 0] : f32 from vector<1x1x1xf32>
    %cst_50 = arith.constant 9.99999993E-9 : f32
    %132 = arith.maximumf %125, %cst_50 : f32
    %133 = arith.divf %131, %132 : f32
    %cst_51 = arith.constant 5.000000e-01 : f32
    %134 = vector.broadcast %cst_51 : f32 to vector<8x128xf32>
    %135 = arith.cmpf oge, %117, %134 : vector<8x128xf32>
    %cst_52 = arith.constant 1.000000e+00 : f32
    %136 = vector.broadcast %133 : f32 to vector<8x128xf32>
    %137 = vector.broadcast %cst_52 : f32 to vector<8x128xf32>
    %138 = arith.select %135, %136, %137 : vector<8x128xi1>, vector<8x128xf32>
    %139 = arith.subf %109, %117 : vector<8x128xf32>
    %140 = math.absf %139 : vector<8x128xf32>
    %141 = vector.shape_cast %140 : vector<8x128xf32> to vector<1x8x128xf32>
    %cst_53 = arith.constant dense<0.000000e+00> : vector<1xf32>
    %142 = vector.multi_reduction <add>, %141, %cst_53 [1, 2] : vector<1x8x128xf32> to vector<1xf32>
    %143 = vector.shape_cast %142 : vector<1xf32> to vector<1x1x1xf32>
    %144 = vector.extract %143[0, 0, 0] : f32 from vector<1x1x1xf32>
    %cst_54 = arith.constant 1.024000e+03 : f32
    %145 = arith.divf %144, %cst_54 : f32
    %cst_55 = arith.constant 0.000000e+00 : f32
    %146 = vector.broadcast %cst_55 : f32 to vector<8x128xf32>
    %147 = arith.maximumf %109, %146 : vector<8x128xf32>
    %148 = arith.mulf %109, %117 : vector<8x128xf32>
    %149 = arith.subf %147, %148 : vector<8x128xf32>
    %150 = math.absf %109 : vector<8x128xf32>
    %cst_56 = arith.constant 0.000000e+00 : f32
    %151 = vector.broadcast %cst_56 : f32 to vector<8x128xf32>
    %152 = arith.subf %151, %150 : vector<8x128xf32>
    %153 = math.exp %152 : vector<8x128xf32>
    %154 = math.log1p %153 : vector<8x128xf32>
    %155 = arith.addf %149, %154 : vector<8x128xf32>
    %156 = arith.mulf %138, %155 : vector<8x128xf32>
    %157 = vector.shape_cast %156 : vector<8x128xf32> to vector<1x8x128xf32>
    %cst_57 = arith.constant dense<0.000000e+00> : vector<1xf32>
    %158 = vector.multi_reduction <add>, %157, %cst_57 [1, 2] : vector<1x8x128xf32> to vector<1xf32>
    %159 = vector.shape_cast %158 : vector<1xf32> to vector<1x1x1xf32>
    %160 = vector.extract %159[0, 0, 0] : f32 from vector<1x1x1xf32>
    %cst_58 = arith.constant 1.024000e+03 : f32
    %161 = arith.divf %160, %cst_58 : f32
    %cst_59 = arith.constant 5.000000e-01 : f32
    %162 = arith.mulf %cst_59, %145 : f32
    %163 = arith.addf %161, %162 : f32
    %164 = arith.extui %15 : vector<8x128xi1> to vector<8x128xi32>
    %165 = arith.sitofp %164 : vector<8x128xi32> to vector<8x128xf32>
    %cst_60 = arith.constant 5.000000e-01 : f32
    %166 = vector.broadcast %cst_60 : f32 to vector<8x128xf32>
    %167 = arith.cmpf ogt, %3, %166 : vector<8x128xf32>
    %168 = arith.extui %167 : vector<8x128xi1> to vector<8x128xi32>
    %169 = arith.sitofp %168 : vector<8x128xi32> to vector<8x128xf32>
    %170 = arith.mulf %165, %169 : vector<8x128xf32>
    %cst_61 = arith.constant dense<0.000000e+00> : vector<8xf32>
    %171 = vector.multi_reduction <add>, %170, %cst_61 [1] : vector<8x128xf32> to vector<8xf32>
    %172 = vector.shape_cast %171 : vector<8xf32> to vector<8x1xf32>
    %cst_62 = arith.constant dense<0.000000e+00> : vector<8xf32>
    %173 = vector.multi_reduction <add>, %169, %cst_62 [1] : vector<8x128xf32> to vector<8xf32>
    %174 = vector.shape_cast %173 : vector<8xf32> to vector<8x1xf32>
    %cst_63 = arith.constant dense<0.000000e+00> : vector<8xf32>
    %175 = vector.multi_reduction <add>, %165, %cst_63 [1] : vector<8x128xf32> to vector<8xf32>
    %176 = vector.shape_cast %175 : vector<8xf32> to vector<8x1xf32>
    %177 = arith.addf %174, %176 : vector<8x1xf32>
    %178 = arith.subf %177, %172 : vector<8x1xf32>
    %cst_64 = arith.constant 9.99999997E-7 : f32
    %179 = vector.broadcast %cst_64 : f32 to vector<8x1xf32>
    %180 = arith.addf %178, %179 : vector<8x1xf32>
    %181 = arith.divf %172, %180 : vector<8x1xf32>
    %cst_65 = arith.constant 5.000000e-01 : f32
    %182 = vector.broadcast %cst_65 : f32 to vector<8x1xf32>
    %183 = arith.cmpf ogt, %181, %182 : vector<8x1xf32>
    %184 = arith.extui %183 : vector<8x1xi1> to vector<8x1xi32>
    %185 = arith.sitofp %184 : vector<8x1xi32> to vector<8x1xf32>
    %186 = arith.subf %5, %181 : vector<8x1xf32>
    %187 = arith.mulf %186, %186 : vector<8x1xf32>
    %188 = arith.mulf %185, %187 : vector<8x1xf32>
    %189 = vector.shape_cast %188 : vector<8x1xf32> to vector<1x8x1xf32>
    %cst_66 = arith.constant dense<0.000000e+00> : vector<1xf32>
    %190 = vector.multi_reduction <add>, %189, %cst_66 [1, 2] : vector<1x8x1xf32> to vector<1xf32>
    %191 = vector.shape_cast %190 : vector<1xf32> to vector<1x1x1xf32>
    %192 = vector.extract %191[0, 0, 0] : f32 from vector<1x1x1xf32>
    %193 = vector.shape_cast %185 : vector<8x1xf32> to vector<1x8x1xf32>
    %cst_67 = arith.constant dense<0.000000e+00> : vector<1xf32>
    %194 = vector.multi_reduction <add>, %193, %cst_67 [1, 2] : vector<1x8x1xf32> to vector<1xf32>
    %195 = vector.shape_cast %194 : vector<1xf32> to vector<1x1x1xf32>
    %196 = vector.extract %195[0, 0, 0] : f32 from vector<1x1x1xf32>
    %197 = tpu.iota {dimensions = array<i32: 0>} : vector<8x128xi32>
    %cst_68 = arith.constant 0.000000e+00 : f32
    %198 = vector.broadcast %cst_68 : f32 to vector<8x128xf32>
    %c0_i32_69 = arith.constant 0 : i32
    %199 = vector.broadcast %c0_i32_69 : i32 to vector<8x128xi32>
    %200 = arith.cmpi eq, %197, %199 : vector<8x128xi32>
    %201 = vector.broadcast %31 : f32 to vector<8x128xf32>
    %202 = arith.select %200, %201, %198 : vector<8x128xi1>, vector<8x128xf32>
    %c1_i32_70 = arith.constant 1 : i32
    %203 = vector.broadcast %c1_i32_70 : i32 to vector<8x128xi32>
    %204 = arith.cmpi eq, %197, %203 : vector<8x128xi32>
    %205 = vector.broadcast %61 : f32 to vector<8x128xf32>
    %206 = arith.select %204, %205, %202 : vector<8x128xi1>, vector<8x128xf32>
    %c2_i32 = arith.constant 2 : i32
    %207 = vector.broadcast %c2_i32 : i32 to vector<8x128xi32>
    %208 = arith.cmpi eq, %197, %207 : vector<8x128xi32>
    %209 = vector.broadcast %163 : f32 to vector<8x128xf32>
    %210 = arith.select %208, %209, %206 : vector<8x128xi1>, vector<8x128xf32>
    %c3_i32 = arith.constant 3 : i32
    %211 = vector.broadcast %c3_i32 : i32 to vector<8x128xi32>
    %212 = arith.cmpi eq, %197, %211 : vector<8x128xi32>
    %213 = vector.broadcast %192 : f32 to vector<8x128xf32>
    %214 = arith.select %212, %213, %210 : vector<8x128xi1>, vector<8x128xf32>
    %c4_i32 = arith.constant 4 : i32
    %215 = vector.broadcast %c4_i32 : i32 to vector<8x128xi32>
    %216 = arith.cmpi eq, %197, %215 : vector<8x128xi32>
    %217 = vector.broadcast %196 : f32 to vector<8x128xf32>
    %218 = arith.select %216, %217, %214 : vector<8x128xi1>, vector<8x128xf32>
    %c0_71 = arith.constant 0 : index
    %c0_72 = arith.constant 0 : index
    %c0_73 = arith.constant 0 : index
    %219 = vector.load %arg6[%c0_71, %c0_72, %c0_73] : memref<1x8x128xf32, #tpu.memory_space<vmem>>, vector<1x8x128xf32>
    %220 = vector.shape_cast %219 : vector<1x8x128xf32> to vector<8x128xf32>
    %221 = vector.shape_cast %218 : vector<8x128xf32> to vector<1x8x128xf32>
    tpu.vector_store %arg6[%c0_71, %c0_72, %c0_73], %221 {strides = array<i32>} : memref<1x8x128xf32, #tpu.memory_space<vmem>>, vector<1x8x128xf32>,
    return
  }
  func.func @transform_0(%arg0: i32, %arg1: memref<2x8xi32, #tpu.memory_space<smem>>, %arg2: memref<2x8xi32, #tpu.memory_space<smem>>) -> (i32, i32, i32) {
    %c0_i32 = arith.constant 0 : i32
    %c0_i32_0 = arith.constant 0 : i32
    %c0_i32_1 = arith.constant 0 : i32
    return %arg0, %c0_i32, %c0_i32_0 : i32, i32, i32
  }
  func.func @transform_3(%arg0: i32, %arg1: memref<2x8xi32, #tpu.memory_space<smem>>, %arg2: memref<2x8xi32, #tpu.memory_space<smem>>) -> (i32, i32, i32) {
    %c0_i32 = arith.constant 0 : i32
    %c0_i32_0 = arith.constant 0 : i32
    %c0_i32_1 = arith.constant 0 : i32
    return %arg0, %c0_i32, %c0_i32_0 : i32, i32, i32
  }
}

</mosaic_0001>

<bundles_post_ra>
// kernel: tpu_custom_call.1
= control target key start
LH: loop header
LB: loop body
LE: loop exit
PB: predicated region body
PF: predicated region fallthrough
CT: control target
= control target key end

     0   :  { %s1127_s0 = inlined_call_operand.hbm [shape: s32[2,8], index: 0, kind: input, shape index: {}]   ;;  %s1128_s2 = inlined_call_operand.vmem [shape: f32[2,8,1], index: 2, kind: input, shape index: {}]   ;;  %s1129_s3 = inlined_call_operand.vmem [shape: f32[16,128], index: 3, kind: input, shape index: {}]   ;;  %s1130_s4 = inlined_call_operand.vmem [shape: f32[16,128], index: 4, kind: input, shape index: {}]   ;;  %s1131_s5 = inlined_call_operand.hbm [shape: f32[2,8,128], index: 5, kind: output, shape index: {}]   ;;  %s1132_s1 = inlined_call_operand.hbm [shape: s32[2,8], index: 1, kind: input, shape index: {}]  }
   0x1   :  { %1134 = sst [smem:[#allocation17_spill]] %s1128_s2  ;;  %s768_s20 = scalar_lea.hbm %s1127_s0, 32 }
   0x2   :  { %p769_p0 = scmp.ne.s32.totalorder %s1127_s0, %s768_s20  ;;  %p772_p1 = scmp.lt.u32.totalorder %s768_s20, %s1127_s0 }
   0x4   :  { %p774_p2 = pnand %p772_p1, %p769_p0 }
   0x6   :  { %777 = shalt.err (!%p774_p2)  }
   0x7   :  { %s874_s25 = smov [#allocation6]   ;;  %s778_s30 = scalar_lea.hbm %s1132_s1, 32 }
   0x8   :  { %11 = dma.hbm_to_smem %s1127_s0, 32, %s874_s25, [#allocation5] }
   0x9   :  { %p779_p3 = scmp.ne.s32.totalorder %s1132_s1, %s778_s30  ;;  %p782_p4 = scmp.lt.u32.totalorder %s778_s30, %s1132_s1 }
   0xb   :  { %p784_p5 = pnand %p782_p4, %p779_p3 }
   0xd   :  { %787 = shalt.err (!%p784_p5)  }
   0xe   :  { %s875_s10 = smov [#allocation7]  }
   0xf   :  { %13 = dma.hbm_to_smem %s1132_s1, 32, %s875_s10, [#allocation5] }
  0x10   :  { %840 = dma.done.wait [#allocation5], 64 }
  0x11   :  { %841 = vsyncadd [#allocation5], 4294967232 }
  0x12   :  { %15 = sfence }
  0x13   :  { %16 = vsyncpa [#allocation9], 0 }
  0x14   :  { %18 = vsyncpa [#allocation9 + $0x1], 0  ;;  %s935_s0 = smov 0   ;;  %s937_s13 = smov 0  }
  0x15   :  { %s939_s14 = smov 0   ;;  %s941_s15 = smov 0  }
  0x16 LB: > { %s956_s1 = sadd.s32 4294967295, %s864_s15   ;;  %s643_s16 = sadd.s32 4294967294, %s864_s15   ;;  %s864_s15 = sphi %s941_s15, %s1146_s15   ;;  %s860_s14 = sphi %s939_s14, %s1145_s14   ;;  %s856_s13 = sphi %s937_s13, %s1144_s13   ;;  %s852_s0 = sphi %s935_s0, %s1143_s0  }
  0x17   : > { %s960_s17 = sadd.s32 1, %s864_s15   ;;  %s57_s18 = sadd.s32 1, %s860_s14 }
  0x18   : > { %s54_s19 = ssub.s32 %s864_s15, %s960_s17  ;;  %p67_p6 = scmp.ne.s32.totalorder %s860_s14, %s856_s13 }
  0x19   : > { %p55_p7 = scmp.eq.s32.totalorder %s54_s19, 0  ;;  %p68_p8 = scmp.eq.s32.totalorder %s956_s1, 1 }
  0x1a   : > { %p73_p9 = scmp.ne.s32.totalorder %s856_s13, %s852_s0  ;;  %p74_p10 = scmp.eq.s32.totalorder %s643_s16, 1 }
  0x1b   : > { %s971_s20 = scalar_select %p55_p7, %s860_s14, %s57_s18  }
  0x1c   : > { %p973_p11 = por %p68_p8, %p67_p6  ;;  %p977_p12 = por %p74_p10, %p73_p9 }
  0x1d   : > { %1135 = sst [smem:[#allocation16_spill]] %s971_s20  ;;  %p646_p13 = scmp.ge.s32.totalorder %s864_s15, 1 }
  0x1e   : > { %p99_p0 = scmp.lt.s32.totalorder %s864_s15, 3 }
  0x20   : > { %p100_p1 = pnand %p646_p13, %p99_p0 }
  0x21   : > { %s1133_s23 = sand.u32 (!%p100_p1), 1, %s856_s13   ;;  %p118_p2 = scmp.lt.s32.totalorder (!%p100_p1), %s956_s1, 1 }
  0x22   : > { %103 = sbr.rel (%p100_p1) target bundleno = 1122 (0x462), region = 24  ;;  %s987_s24 = sshll.u32 (!%p100_p1), %s1133_s23, 3 }
  0x23   : > { %s1138_s2 = sld [smem:[#allocation17_spill]] (!%p100_p1)  ;;  %s866_s6 = smov (!%p100_p1), 0  }
  0x29   : > { %s119_s25 = scalar_select %p118_p2, %s956_s1, 1 }
  0x2b   : > { %s648_s26 = sshll.u32 %s119_s25, 3 }
  0x2c   : > { %s993_s29 = scalar_lea.vmem %s1138_s2, %s648_s26 }
  0x2d LB: >> { %s128_s7 = sshra.s32 %s868_s6, 7  ;;  %s133_s8 = sand.u32 127, %s868_s6  ;;  %s868_s6 = sphi %s866_s6, %s127_s6  }
  0x2e   : >> { %s130_s9 = sadd.s32 %s956_s1, %s128_s7  ;;  %s650_s18 = sshll.u32 %s956_s1, 3 }
  0x2f   : >> { %s649_s10 = sshll.u32 %s130_s9, 7  ;;  %s140_s28 = scalar_lea.vmem [#allocation2], %s868_s6 }
  0x30   : >> { %s134_s11 = sadd.s32 %s649_s10, %s133_s8 }
  0x31   : >> { %s135_s12 = sld [smem:[#allocation6 + %s134_s11]] }
  0x32   : >> { %s136_s16 = sld [smem:[#allocation7 + %s134_s11]] }
  0x37   : >> { %s138_s19 = sadd.s32 %s650_s18, %s135_s12 }
  0x38   : >> { %s139_s26 = scalar_lea.vmem %s1129_s3, %s138_s19 }
  0x39   : >> { %v158_v0 = vld [vmem:[%s139_s26] sm:$0x1] }
  0x3a   : >> { %159 = vst [vmem:[%s140_s28] sm:$0x1] %v158_v0 }
  0x3b   : >> { %184 = vsyncadd [#allocation4], 16  ;;  %s185_s23 = sadd.s32 %s650_s18, %s136_s16  ;;  %s187_s7 = scalar_lea.vmem [#allocation3], %s868_s6 }
  0x3c   : >> { %s186_s20 = scalar_lea.vmem %s1130_s4, %s185_s23 }
  0x3d   : >> { %v206_v1 = vld [vmem:[%s186_s20] sm:$0x1] }
  0x3e   : >> { %207 = vst [vmem:[%s187_s7] sm:$0x1] %v206_v1 }
  0x3f   : >> { %232 = vsyncadd [#allocation4 + $0x1], 16  ;;  %s127_s6 = sadd.s32 1, %s868_s6  }
  0x40   : >> { %p124_p3 = scmp.ge.s32.totalorder %s127_s6, 8  }
  0x41   : > { %s870_s8 = smov (%p124_p3), 0  }
  0x42   : > { %126 = sbr.rel (!%p124_p3) target bundleno = 45 (0x2d), region = 160 }
  0x49 LB: >> { %842 = dma.done.wait [#allocation4], 16  ;;  %s872_s8 = sphi %s870_s8, %s238_s8  }
  0x4a   : >> { %843 = vsyncadd [#allocation4], 4294967280 }
  0x4b   : >> { %844 = dma.done.wait [#allocation4 + $0x1], 16 }
  0x4c   : >> { %845 = vsyncadd [#allocation4 + $0x1], 4294967280  ;;  %s238_s8 = sadd.s32 1, %s872_s8  }
  0x4d   : >> { %p235_p4 = scmp.ge.s32.totalorder %s238_s8, 8  }
  0x4e   : > { %v1004_v2 = vld [vmem:[#allocation3] sm:$0xff] (%p235_p4)  ;;  %v1006_v3 = vld [vmem:[#allocation2] sm:$0xff] (%p235_p4)  ;;  %s876_s2 = smov (%p235_p4), 1   ;;  %s877_s20 = smov (%p235_p4), 127   ;;  %v316_v30 = vlaneseq (%p235_p4)  ;;  %vm302_vm6 = vcmask (%p235_p4), 7168  }
  0x4f   : > { %237 = sbr.rel (!%p235_p4) target bundleno = 73 (0x49), region = 171  ;;  %293 = vadd.xlane.f32.xlu0 (%p235_p4), %v1004_v2  ;;  %v248_v4 = vand.u32 (%p235_p4), 2147483647, %v1006_v3  ;;  %vm263_vm0 = vcmp.ge.f32.partialorder (%p235_p4), %v1006_v3, 0.0  ;;  %v268_v25 = vmax.f32 (%p235_p4), %v1006_v3, 0.0  ;;  %v269_v26 = vmul.f32 (%p235_p4), %v1004_v2, %v1006_v3 }
  0x50   : > { %v317_v32 = vand.u32 (%p235_p4), 127, %v316_v30  ;;  %v1023_v39 = vshrl.u32 (%p235_p4), %v316_v30, 7  ;;  %v336_v0 = vmul.f32 (%p235_p4), 9.0, %v1006_v3  ;;  %vm463_vm8 = vcmp.gt.f32.partialorder (%p235_p4), %v1004_v2, 0.5  ;;  %s879_s19 = smov (%p235_p4), 1e-08  }
  0x51   : > { %v249_v5 = vsub.f32 (%p235_p4), 0.0, %v248_v4  ;;  %v270_v27 = vsub.f32 (%p235_p4), %v268_v25, %v269_v26 }
  0x52   : > { %vm320_vm2 = vcmp.eq.s32.totalorder (%p235_p4), %v317_v32, 0  ;;  %vm321_vm3 = vcmp.eq.s32.totalorder (%p235_p4), %v317_v32, 127  ;;  %vm322_vm4 = vcmp.eq.s32.totalorder (%p235_p4), %v1023_v39, 0  ;;  %vm323_vm5 = vcmp.eq.s32.totalorder (%p235_p4), %v1023_v39, 7 }
  0x53   : > { %v250_v6 = vmul.f32 (%p235_p4), 1.442695, %v249_v5  ;;  %vm506_vm11 = vcmp.eq.s32.totalorder (%p235_p4), %v1023_v39, 1  ;;  %vm509_vm12 = vcmp.eq.s32.totalorder (%p235_p4), %v1023_v39, 2  ;;  %vm512_vm13 = vcmp.eq.s32.totalorder (%p235_p4), %v1023_v39, 3 }
  0x54   : > { %vm515_vm14 = vcmp.eq.s32.totalorder (%p235_p4), %v1023_v39, 4 }
  0x55   : > { %748 = vpow2.f32 (%p235_p4), %v250_v6  ;;  %v352_v6 = vmul.f32 (%p235_p4), 9.0, %v1004_v2 }
  0x5f   : > { %v749_v7 = vpop.eup %748 }
  0x60   : > { %v252_v8 = vadd.f32 1.0, %v749_v7  ;;  %v266_v9 = vsel %vm263_vm0, %v749_v7, 1.0  ;;  %v264_v11 = vsel %vm263_vm0, 1.0, %v749_v7  ;;  %v255_v18 = vmul.f32 -0.5, %v749_v7 }
  0x61   : > { %v258_v19 = vand.u32 2147483647, %v749_v7 }
  0x62   : > { %750 = vrcp.f32 %v252_v8  ;;  %v256_v20 = vadd.f32 1.0, %v255_v18 }
  0x63   : > { %752 = vlog2.f32 %v252_v8  ;;  %vm259_vm1 = vcmp.lt.f32.partialorder %v258_v19, 0.0004427343 }
  0x64   : > { %v257_v21 = vmul.f32 %v749_v7, %v256_v20 }
  0x6c   : > { %v751_v10 = vpop.eup %750 }
  0x6d   : > { %v267_v12 = vmul.f32 %v751_v10, %v266_v9  ;;  %v265_v13 = vmul.f32 %v751_v10, %v264_v11  ;;  %v753_v22 = vpop.eup %752 }
  0x6e   : > { %v254_v23 = vmul.f32 0.6931472, %v753_v22 }
  0x6f   : > { %v284_v14 = vmul.f32 %v267_v12, %v267_v12 }
  0x70   : > { %v260_v24 = vsel %vm259_vm1, %v257_v21, %v254_v23 }
  0x71   : > { %v285_v15 = vmax.f32 %v284_v14, 1e-08  ;;  %v271_v28 = vadd.f32 %v270_v27, %v260_v24 }
  0x73   : > { %v286_v16 = vmul.f32 %v285_v15, %v265_v13 }
  0x75   : > { %291 = vadd.xlane.f32.xlu0 %v286_v16  ;;  %v287_v17 = vmul.f32 %v286_v16, %v1004_v2 }
  0x77   : > { %288 = vadd.xlane.f32.xlu1 %v287_v17 }
  0x88   : > { %324 = vrot.lane.b32.xlu1 %v1006_v3, %s876_s2 }
  0x8b   : > { %327 = vrot.lane.b32.xlu0 %v1006_v3, %s877_s20 }
  0x8c   : > { %340 = vrot.lane.b32.xlu1 %v1004_v2, %s876_s2 }
  0x90   : > { %343 = vrot.lane.b32.xlu1 %v1004_v2, %s877_s20 }
  0xb4   : > { %272 = vadd.xlane.f32.xlu1 %v271_v28 }
  0xdc   : > { %v294_v29 = vpop.xlane.xlu0 %293 }
 0x102   : > { %v292_v31 = vpop.xlane.xlu0 %291 }
 0x103   : > { %v295_v33 = vadd.f32 %v294_v29, %v292_v31 }
 0x104   : > { %v289_v34 = vpop.xlane.xlu1 %288 }
 0x105   : > { %v297_v35 = vadd.f32 1.0, %v295_v33  ;;  %v290_v46 = vmul.f32 2.0, %v289_v34 }
 0x106   : > { %v328_v36 = vpop.permute.xlu0 %327 }
 0x107   : > { %v298_v37 = vadd.f32 1e-08, %v297_v35  ;;  %v329_v41 = vsel %vm321_vm3, %v1006_v3, %v328_v36  ;;  %v296_v53 = vadd.f32 1.0, %v290_v46  ;;  %v878_v46 = vmov 0.0  }
 0x108   : > { %v325_v38 = vpop.permute.xlu1 %324 }
 0x109   : > { %754 = vrcp.f32 %v298_v37  ;;  %v326_v40 = vsel %vm320_vm2, %v1006_v3, %v325_v38 }
 0x10a   : > { %v330_v42 = vadd.f32 %v326_v40, %v1006_v3 }
 0x10c   : > { %v331_v43 = vadd.f32 %v330_v42, %v329_v41  ;;  %v341_v44 = vpop.permute.xlu1 %340 }
 0x10d   : > { %v342_v45 = vsel %vm320_vm2, %v1004_v2, %v341_v44 }
 0x10e   : > { %v332_v47 = vrot.slane %v331_v43, 7  ;;  %v346_v48 = vadd.f32 %v342_v45, %v1004_v2  ;;  %v334_v50 = vrot.slane %v331_v43, 1 }
 0x110   : > { %v333_v49 = vsel %vm322_vm4, %v331_v43, %v332_v47  ;;  %v344_v51 = vpop.permute.xlu1 %343  ;;  %v335_v58 = vsel %vm323_vm5, %v331_v43, %v334_v50 }
 0x111   : > { %v345_v52 = vsel %vm321_vm3, %v1004_v2, %v344_v51  ;;  %v337_v56 = vadd.f32 %v333_v49, %v331_v43  ;;  %v653_v49 = vsel %vm463_vm8, 1.0, %v878_v46  ;;  %v652_v51 = vsel %vm263_vm0, 1.0, %v878_v46 }
 0x112   : > { %v347_v54 = vadd.f32 %v346_v48, %v345_v52 }
 0x113   : > { %v755_v55 = vpop.eup %754  ;;  %v338_v1 = vadd.f32 %v337_v56, %v335_v58 }
 0x114   : > { %v300_v57 = vmul.f32 %v755_v55, %v296_v53  ;;  %v348_v59 = vrot.slane %v347_v54, 7  ;;  %v350_v60 = vrot.slane %v347_v54, 1  ;;  %v466_v53 = vmul.f32 %v653_v49, %v652_v51 }
 0x115   : > { %v339_v8 = vsub.f32 %v336_v0, %v338_v1 }
 0x116   : > { %v301_v61 = vsub.f32 1.0, %v300_v57  ;;  %v349_v62 = vsel %vm322_vm4, %v347_v54, %v348_v59  ;;  %v351_v63 = vsel %vm323_vm5, %v347_v54, %v350_v60 }
 0x117   : > { %v353_v4 = vadd.f32 %v349_v62, %v347_v54 }
 0x118   : > { %v303_v5 = vsel %vm302_vm6, %v301_v61, 0.0 }
 0x119   : > { %304 = vadd.xlane.f32.xlu0 %v303_v5  ;;  %v354_v7 = vadd.f32 %v353_v4, %v351_v63 }
 0x11b   : > { %v355_v9 = vsub.f32 %v352_v6, %v354_v7 }
 0x11d   : > { %356 = vmax.xlane.f32.xlu0 %v339_v8 }
 0x121   : > { %371 = vmax.xlane.f32.xlu0 %v355_v9 }
 0x141   : > { %v273_v10 = vpop.xlane.xlu1 %272 }
 0x142   : > { %v274_v11 = vrot.slane %v273_v10, 4 }
 0x144   : > { %v275_v12 = vadd.f32 %v274_v11, %v273_v10 }
 0x146   : > { %v276_v13 = vrot.slane %v275_v12, 2 }
 0x148   : > { %v277_v14 = vadd.f32 %v276_v13, %v275_v12  ;;  %v247_v12 = vld [vmem:[%s993_s29] sm:$0xff] }
 0x14a   : > { %v278_v15 = vrot.slane %v277_v14, 1 }
 0x14c   : > { %v279_v16 = vadd.f32 %v278_v15, %v277_v14 }
 0x14e   : > { %661 = vpush %v279_v16 }
 0x17f   : > { %s1042_s23 = spop %661 }
 0x180   : > { %s283_s7 = smul.f32 0.0009765625, %s1042_s23 }
 0x1a6   : > { %v305_v17 = vpop.xlane.xlu0 %304 }
 0x1a7   : > { %v306_v18 = vrot.slane %v305_v17, 4 }
 0x1a9   : > { %v307_v19 = vadd.f32 %v306_v18, %v305_v17 }
 0x1aa   : > { %v357_v20 = vpop.xlane.xlu0 %356 }
 0x1ab   : > { %v308_v21 = vrot.slane %v307_v19, 2  ;;  %v358_v22 = vrot.slane %v357_v20, 4 }
 0x1ad   : > { %v359_v23 = vmax.f32 %v357_v20, %v358_v22  ;;  %v309_v24 = vadd.f32 %v308_v21, %v307_v19 }
 0x1ae   : > { %v372_v31 = vpop.xlane.xlu0 %371 }
 0x1af   : > { %v360_v25 = vrot.slane %v359_v23, 2  ;;  %v310_v26 = vrot.slane %v309_v24, 1  ;;  %v373_v32 = vrot.slane %v372_v31, 4 }
 0x1b1   : > { %v311_v27 = vadd.f32 %v310_v26, %v309_v24  ;;  %v361_v28 = vmax.f32 %v359_v23, %v360_v25  ;;  %v374_v33 = vmax.f32 %v372_v31, %v373_v32 }
 0x1b3   : > { %663 = vpush %v311_v27  ;;  %v362_v29 = vrot.slane %v361_v28, 1  ;;  %v375_v34 = vrot.slane %v374_v33, 2 }
 0x1b5   : > { %v363_v30 = vmax.f32 %v361_v28, %v362_v29  ;;  %v376_v36 = vmax.f32 %v374_v33, %v375_v34 }
 0x1b7   : > { %665 = vpush %v363_v30  ;;  %v377_v37 = vrot.slane %v376_v36, 1 }
 0x1b9   : > { %v378_v40 = vmax.f32 %v376_v36, %v377_v37 }
 0x1e4   : > { %s1044_s30 = spop %663 }
 0x1e5   : > { %s315_s2 = smul.f32 0.125, %s1044_s30  ;;  %s1139_s30 = scalar_lea.vmem [#allocation8], %s987_s24 }
 0x1e8   : > { %s666_s6 = spop %665 }
 0x1e9   : > { %s365_s9 = sadd.f32 1e-08, %s666_s6 }
 0x1eb   : > { %v366_v35 = vstv %s365_s9 }
 0x1ec   : > { %756 = vrcp.f32 %v366_v35 }
 0x1f6   : > { %v757_v38 = vpop.eup %756 }
 0x1f7   : > { %667 = vpush %v757_v38 }
 0x1f8   : > { %669 = vpush %v378_v40 }
 0x228   : > { %s668_s10 = spop %667 }
 0x229   : > { %s670_s11 = spop %669  ;;  %v369_v45 = vstv %s668_s10  ;;  %s656_s10 = sshll.u32 %s956_s1, 7 }
 0x22a   : > { %s380_s12 = sadd.f32 1e-08, %s670_s11  ;;  %v1052_v50 = vmul.f32 %v369_v45, %v339_v8 }
 0x22c   : > { %v381_v41 = vstv %s380_s12  ;;  %v432_v28 = vand.u32 2147483647, %v1052_v50  ;;  %v429_v37 = vmax.f32 %v1052_v50, 0.0 }
 0x22d   : > { %758 = vrcp.f32 %v381_v41 }
 0x22e   : > { %v433_v29 = vsub.f32 0.0, %v432_v28 }
 0x230   : > { %v434_v30 = vmul.f32 1.442695, %v433_v29 }
 0x237   : > { %v759_v42 = vpop.eup %758 }
 0x238   : > { %671 = vpush %v759_v42 }
 0x269   : > { %s672_s16 = spop %671 }
 0x26a   : > { %v384_v43 = vstv %s672_s16  ;;  %s533_s16 = sshll.u32 %s1139_s30, 4  ;;  %s1083_s16 = int_to_ptr.vmem [resolvable:$true] %s533_s16 }
 0x26b   : > { %v1046_v44 = vmul.f32 %v384_v43, %v355_v9 }
 0x26d   : > { %vm386_vm7 = vcmp.ge.f32.partialorder %v1046_v44, 0.5  ;;  %v415_v52 = vsub.f32 %v1052_v50, %v1046_v44  ;;  %v430_v35 = vmul.f32 %v1046_v44, %v1052_v50 }
 0x26e   : > { %v651_v47 = vsel %vm386_vm7, 1.0, %v878_v46 }
 0x26f   : > { %389 = vadd.xlane.f32.xlu1 %v651_v47  ;;  %v398_v48 = vsub.f32 1.0, %v651_v47  ;;  %v416_v2 = vand.u32 2147483647, %v415_v52  ;;  %v431_v41 = vsub.f32 %v429_v37, %v430_v35 }
 0x271   : > { %399 = vadd.xlane.f32.xlu0 %v398_v48 }
 0x273   : > { %469 = vadd.xlane.f32.xlu1 %v653_v49 }
 0x275   : > { %471 = vadd.xlane.f32.xlu0 %v652_v51 }
 0x277   : > { %467 = vadd.xlane.f32.xlu1 %v466_v53 }
 0x279   : > { %417 = vadd.xlane.f32.xlu0 %v416_v2 }
 0x2fc   : > { %v390_v54 = vpop.xlane.xlu1 %389 }
 0x2fd   : > { %v391_v55 = vrot.slane %v390_v54, 4 }
 0x2fe   : > { %v400_v56 = vpop.xlane.xlu0 %399 }
 0x2ff   : > { %v392_v57 = vadd.f32 %v391_v55, %v390_v54  ;;  %v401_v58 = vrot.slane %v400_v56, 4 }
 0x300   : > { %v470_v59 = vpop.xlane.xlu1 %469 }
 0x301   : > { %v393_v60 = vrot.slane %v392_v57, 2  ;;  %v402_v61 = vadd.f32 %v401_v58, %v400_v56 }
 0x302   : > { %v472_v62 = vpop.xlane.xlu0 %471 }
 0x303   : > { %v403_v3 = vrot.slane %v402_v61, 2  ;;  %v394_v63 = vadd.f32 %v393_v60, %v392_v57  ;;  %v473_v0 = vadd.f32 %v472_v62, %v470_v59 }
 0x304   : > { %v468_v1 = vpop.xlane.xlu1 %467 }
 0x305   : > { %v395_v4 = vrot.slane %v394_v63, 1  ;;  %v404_v5 = vadd.f32 %v403_v3, %v402_v61  ;;  %v474_v6 = vsub.f32 %v473_v0, %v468_v1 }
 0x306   : > { %v418_v19 = vpop.xlane.xlu0 %417 }
 0x307   : > { %v396_v7 = vadd.f32 %v395_v4, %v394_v63  ;;  %v405_v8 = vrot.slane %v404_v5, 1  ;;  %v475_v9 = vadd.f32 1e-06, %v474_v6  ;;  %v419_v20 = vrot.slane %v418_v19, 4 }
 0x308   : > { %v504_v6 = vstv %s283_s7 }
 0x309   : > { %673 = vpush %v396_v7  ;;  %v406_v10 = vadd.f32 %v405_v8, %v404_v5  ;;  %760 = vrcp.f32 %v475_v9  ;;  %v420_v21 = vadd.f32 %v419_v20, %v418_v19  ;;  %v505_v7 = vsel %vm322_vm4, %v504_v6, 0.0 }
 0x30a   : > { %v507_v8 = vstv %s315_s2 }
 0x30b   : > { %675 = vpush %v406_v10  ;;  %v421_v22 = vrot.slane %v420_v21, 2  ;;  %v508_v9 = vsel %vm506_vm11, %v507_v8, %v505_v7 }
 0x30d   : > { %v422_v24 = vadd.f32 %v421_v22, %v420_v21 }
 0x30f   : > { %v423_v25 = vrot.slane %v422_v24, 1 }
 0x311   : > { %v424_v27 = vadd.f32 %v423_v25, %v422_v24 }
 0x313   : > { %v761_v11 = vpop.eup %760 }
 0x314   : > { %v477_v13 = vmul.f32 %v761_v11, %v468_v1 }
 0x316   : > { %vm478_vm9 = vcmp.gt.f32.partialorder %v477_v13, 0.5  ;;  %v481_v14 = vsub.f32 %v247_v12, %v477_v13 }
 0x317   : > { %v654_v15 = vsel %vm478_vm9, 1.0, %v878_v46 }
 0x318   : > { %v482_v16 = vmul.f32 %v481_v14, %v481_v14  ;;  %v494_v49 = vsel %vm302_vm6, %v654_v15, 0.0 }
 0x31a   : > { %v483_v17 = vmul.f32 %v654_v15, %v482_v16 }
 0x31c   : > { %v484_v18 = vsel %vm302_vm6, %v483_v17, 0.0 }
 0x31d   : > { %485 = vadd.xlane.f32.xlu0 %v484_v18 }
 0x33a   : > { %s674_s18 = spop %673 }
 0x33b   : > { %s408_s25 = smax.f32 %s879_s19, %s674_s18  ;;  %s1081_s19 = scalar_lea.hbm %s1131_s5, %s656_s10 }
 0x33c   : > { %v409_v23 = vstv %s408_s25  ;;  %s676_s29 = spop %675  ;;  %s1140_s25 = smov %s1139_s30 }
 0x33d   : > { %762 = vrcp.f32 %v409_v23 }
 0x33e   : > { %764 = vpow2.f32 %v434_v30 }
 0x347   : > { %v763_v26 = vpop.eup %762 }
 0x348   : > { %677 = vpush %v763_v26  ;;  %v765_v31 = vpop.eup %764 }
 0x349   : > { %679 = vpush %v424_v27  ;;  %v436_v32 = vadd.f32 1.0, %v765_v31  ;;  %v439_v33 = vmul.f32 -0.5, %v765_v31  ;;  %v442_v38 = vand.u32 2147483647, %v765_v31 }
 0x34b   : > { %766 = vlog2.f32 %v436_v32  ;;  %v440_v36 = vadd.f32 1.0, %v439_v33  ;;  %vm443_vm10 = vcmp.lt.f32.partialorder %v442_v38, 0.0004427343 }
 0x34d   : > { %v441_v42 = vmul.f32 %v765_v31, %v440_v36 }
 0x355   : > { %v767_v34 = vpop.eup %766 }
 0x356   : > { %v438_v40 = vmul.f32 0.6931472, %v767_v34 }
 0x358   : > { %v444_v43 = vsel %vm443_vm10, %v441_v42, %v438_v40 }
 0x359   : > { %v445_v46 = vadd.f32 %v444_v43, %v431_v41 }
 0x379   : > { %s678_s27 = spop %677 }
 0x37a   : > { %s412_s26 = smul.f32 %s678_s27, %s676_s29  ;;  %s680_s28 = spop %679 }
 0x37b   : > { %s428_s8 = smul.f32 0.0009765625, %s680_s28  ;;  %s1141_s29 = sand.u32 1, %s856_s13  }
 0x37c   : > { %v413_v45 = vstv %s412_s26  ;;  %s520_s27 = scalar_lea.sflag [#allocation9], %s1141_s29  ;;  %s788_s26 = scalar_lea.vmem %s1083_s16, 128 }
 0x37d   : > { %v414_v47 = vsel %vm386_vm7, %v413_v45, 1.0  ;;  %s459_s20 = smul.f32 0.5, %s428_s8  ;;  %p789_p5 = scmp.ne.s32.totalorder %s1083_s16, %s788_s26 }
 0x37e   : > { %v446_v48 = vmul.f32 %v445_v46, %v414_v47  ;;  %s880_s28 = smov [#allocation8]  }
 0x37f   : > { %p790_p6 = pnand %p789_p5, %p973_p11  ;;  %s792_s7 = sshll.u32 %s880_s28, 4  ;;  %s793_s7 = int_to_ptr.vmem [resolvable:$false] %s792_s7 }
 0x380   : > { %447 = vadd.xlane.f32.xlu1 %v446_v48  ;;  %s794_s8 = scalar_lea.vmem %s793_s7, 256  ;;  %p795_p8 = scmp.lt.s32.totalorder %s1083_s16, %s793_s7 }
 0x381   : > { %p791_p7 = pneg %p790_p6  ;;  %p796_p9 = scmp.lt.s32.totalorder %s794_s8, %s788_s26 }
 0x383   : > { %p797_p10 = por %p796_p9, %p795_p8 }
 0x384   : > { %495 = vadd.xlane.f32.xlu1 %v494_v49 }
 0x385   : > { %p798_p13 = pnand %p797_p10, %p791_p7 }
 0x3aa   : > { %v486_v50 = vpop.xlane.xlu0 %485 }
 0x3ab   : > { %v487_v51 = vrot.slane %v486_v50, 4 }
 0x3ad   : > { %v488_v52 = vadd.f32 %v487_v51, %v486_v50 }
 0x3af   : > { %v489_v53 = vrot.slane %v488_v52, 2 }
 0x3b1   : > { %v490_v56 = vadd.f32 %v489_v53, %v488_v52 }
 0x3b3   : > { %v491_v61 = vrot.slane %v490_v56, 1 }
 0x3b5   : > { %v492_v1 = vadd.f32 %v491_v61, %v490_v56 }
 0x40d   : > { %v448_v2 = vpop.xlane.xlu1 %447 }
 0x40e   : > { %v449_v54 = vrot.slane %v448_v2, 4 }
 0x410   : > { %v450_v55 = vadd.f32 %v449_v54, %v448_v2 }
 0x411   : > { %v496_v57 = vpop.xlane.xlu1 %495 }
 0x412   : > { %v451_v58 = vrot.slane %v450_v55, 2  ;;  %v497_v59 = vrot.slane %v496_v57, 4 }
 0x414   : > { %v498_v60 = vadd.f32 %v497_v59, %v496_v57  ;;  %v452_v44 = vadd.f32 %v451_v58, %v450_v55 }
 0x416   : > { %v499_v62 = vrot.slane %v498_v60, 2  ;;  %v453_v3 = vrot.slane %v452_v44, 1 }
 0x418   : > { %v500_v63 = vadd.f32 %v499_v62, %v498_v60  ;;  %v454_v0 = vadd.f32 %v453_v3, %v452_v44 }
 0x41a   : > { %681 = vpush %v454_v0  ;;  %v501_v4 = vrot.slane %v500_v63, 1 }
 0x41b   : > { %683 = vpush %v492_v1 }
 0x41c   : > { %v502_v5 = vadd.f32 %v501_v4, %v500_v63 }
 0x41e   : > { %685 = vpush %v502_v5 }
 0x44b   : > { %s682_s6 = spop %681 }
 0x44c   : > { %s458_s9 = smul.f32 0.0009765625, %s682_s6  ;;  %s684_s12 = spop %683 }
 0x44d   : > { %v513_v12 = vstv %s684_s12 }
 0x44e   : > { %s460_s11 = sadd.f32 %s459_s20, %s458_s9 }
 0x44f   : > { %s686_s23 = spop %685 }
 0x450   : > { %v510_v10 = vstv %s460_s11  ;;  %v516_v14 = vstv %s686_s23 }
 0x451   : > { %v511_v11 = vsel %vm509_vm12, %v510_v10, %v508_v9 }
 0x452   : > { %v514_v13 = vsel %vm512_vm13, %v513_v12, %v511_v11 }
 0x453   : > { %v517_v15 = vsel %vm515_vm14, %v516_v14, %v514_v13 }
 0x454   : > { %518 = vst [vmem:[%s1140_s25] sm:$0xff] %v517_v15 }
 0x455   : > { %801 = shalt.err (!%p798_p13)
}
 0x456   : > { %s802_s24 = scalar_lea.hbm %s1081_s19, 128  ;;  %s806_s6 = scalar_lea.hbm %s1131_s5, 256 }
 0x457   : > { %p803_p0 = scmp.ne.s32.totalorder %s1081_s19, %s802_s24  ;;  %p807_p3 = scmp.lt.u32.totalorder %s1081_s19, %s1131_s5 }
 0x458   : > { %p808_p4 = scmp.lt.u32.totalorder %s806_s6, %s802_s24  ;;  %p810_p6 = scmp.lt.u32.totalorder %s802_s24, %s1081_s19 }
 0x459   : > { %p804_p1 = pnand %p803_p0, %p973_p11 }
 0x45a   : > { %p809_p5 = por %p808_p4, %p807_p3 }
 0x45b   : > { %p805_p2 = pneg %p804_p1 }
 0x45c   : > { %p811_p7 = por %p810_p6, %p809_p5 }
 0x45e   : > { %p812_p8 = pnand %p811_p7, %p805_p2 }
 0x460   : > { %815 = shalt.err (!%p812_p8)
}
 0x461   : > { %687 = dma.vmem_to_hbm [thread:$0]  (%p973_p11), %s1083_s16, 128, %s1081_s19, %s520_s27  }
 0x462 PF: > { %p693_p9 = scmp.ge.s32.totalorder %s864_s15, 2  ;;  %s545_s11 = sand.u32 1, %s852_s0  }
 0x463   : > { %s546_s12 = scalar_lea.sflag [#allocation9], %s545_s11 }
 0x464   : > { %p690_p10 = pnand %p693_p9, %p977_p12 }
 0x466   : > { %847 = dma.done.wait (!%p690_p10), %s546_s12, 128  }
 0x467   : > { %849 = vsyncadd (!%p690_p10), %s546_s12, 4294967168  ;;  %s1142_s23 = sld [smem:[#allocation16_spill]]  ;;  %p21_p13 = scmp.ge.s32.totalorder %s960_s17, 4  }
 0x468   : > { %s1143_s0 = smov %s856_s13  ;;  %s1144_s13 = smov %s860_s14 }
 0x469   : > { %s1146_s15 = smov %s960_s17  ;;  %23 = sbr.rel (!%p21_p13) target bundleno = 22 (0x16), region = 182 }
 0x46d   : > { %s1145_s14 = smov %s1142_s23 }
 0x470   :  { %551 = vsyncpa [#allocation9], 1 }
 0x471   :  { %553 = vsyncpa [#allocation9 + $0x1], 1 }
 0x472   :  { %554 = vsyncmov [#allocation4] }
 0x475   :  { %s555_s15 = vpop.sfrf %554 }
 0x476   :  { %p659_p11 = scmp.ne.s32.totalorder %s555_s15, 0 }
 0x478   :  { %559 = shalt.err (%p659_p11)  }
 0x479   :  { %561 = vsyncmov [#allocation4 + $0x1] }
 0x47c   :  { %s562_s21 = vpop.sfrf %561 }
 0x47d   :  { %p660_p12 = scmp.ne.s32.totalorder %s562_s21, 0 }
 0x47f   :  { %566 = shalt.err (%p660_p12)  }

</bundles_post_ra>
